<compile_context>
chip_gen: v7x
topology: tpu7x:2x2x1
jax: 0.10.0
libtpu: 0.0.40
codegen_flags: <defaults>
</compile_context>

<pallas_src>
import functools

import jax
import jax.numpy as jnp
from jax.experimental import pallas as pl
from jax.experimental.pallas import tpu as pltpu


def _round_up(x, m):
    return (x + m - 1) // m * m


# ----------------------------------------------------------------------------
# Kernel: one grid step = one RNN time step. Weights resident, state in scratch.
# ----------------------------------------------------------------------------
def rnn_seq_kernel(x_ref, h0_ref, w1x_ref, w1s_ref, b1_ref, w2_ref, b2_ref,
                   out_ref, s_ref, *, hidden_size, output_size):
    t = pl.program_id(0)

    @pl.when(t == 0)
    def _():
        s_ref[...] = h0_ref[...]          # initial hidden, embedded in the slab

    x_t = x_ref[0]                                    # (Bp, I)   bf16
    h_slab = s_ref[...].astype(w1s_ref.dtype)         # (Bp, N2)  bf16 MXU operand

    # Stage 1: both first-layer Linears fused (shared LHS). cat(x, h) @ W1 is
    # replaced by x @ W1x + slab @ W1s (logit/pad lanes of the slab hit zero
    # weight rows). Single lane-dense N1=128 output per operand.
    a1 = (jnp.dot(x_t, w1x_ref[...], preferred_element_type=jnp.float32)
          + jnp.dot(h_slab, w1s_ref[...], preferred_element_type=jnp.float32)
          + b1_ref[...])
    a1 = jnp.maximum(a1, 0.0)                         # ReLU for both branches

    # Stage 2: block-diagonal second layer -> one lane-dense pass.
    # Slab layout: cols [0,H) = new hidden, [H,H+O) = logits, rest zero pad.
    z2 = jnp.dot(a1.astype(w2_ref.dtype), w2_ref[...],
                 preferred_element_type=jnp.float32) + b2_ref[...]

    s_ref[...] = z2                                   # carry state to next step

    # Masked, numerically-stable log-softmax over the logit lanes only.
    col = jax.lax.broadcasted_iota(jnp.int32, z2.shape, 1)
    is_logit = (col >= hidden_size) & (col < hidden_size + output_size)
    neg_inf = jnp.float32(-jnp.inf)
    m = jnp.max(jnp.where(is_logit, z2, neg_inf), axis=1, keepdims=True)
    e = jnp.exp(jnp.where(is_logit, z2 - m, neg_inf))       # exp(-inf)=0 off-mask
    lse = m + jnp.log(jnp.sum(e, axis=1, keepdims=True))

    # One full-width lane-dense store: hidden lanes keep z2, logit lanes get
    # log-probs, padding lanes keep (zero) z2.
    out_ref[0] = jnp.where(is_logit, z2 - lse, z2).astype(out_ref.dtype)


# ----------------------------------------------------------------------------
# Parameter fusion / padding (done once, outside the kernel)
# ----------------------------------------------------------------------------
def fuse_params(p, input_size, hidden_size, output_size,
                compute_dtype=jnp.bfloat16):
    I, H, O = input_size, hidden_size, output_size
    H2 = 2 * hidden_size                    # width of each first-layer branch
    N1 = _round_up(2 * H2, 128)             # fused first-layer output width
    N2 = _round_up(H + O, 128)              # fused second-layer output width (slab)

    # First layer: [w1h | w1o] along the output axis, zero-padded to N1 lanes.
    w1 = jnp.zeros((I + H, N1), jnp.float32)
    w1 = w1.at[:, :H2].set(p["w1h"])
    w1 = w1.at[:, H2:2 * H2].set(p["w1o"])
    b1 = jnp.zeros((1, N1), jnp.float32)
    b1 = b1.at[:, :H2].set(p["b1h"])
    b1 = b1.at[:, H2:2 * H2].set(p["b1o"])

    # Hidden part of W1, re-embedded at rows [0, H) of an (N2, N1) matrix so
    # the carried (Bp, N2) state slab can be matmul'd directly.
    w1s = jnp.zeros((N2, N1), jnp.float32)
    w1s = w1s.at[:H, :].set(w1[I:, :])

    # Second layer: block-diagonal stack of w2h / w2o, zero-padded to (N1, N2).
    w2 = jnp.zeros((N1, N2), jnp.float32)
    w2 = w2.at[:H2, :H].set(p["w2h"])
    w2 = w2.at[H2:2 * H2, H:H + O].set(p["w2o"])
    b2 = jnp.zeros((1, N2), jnp.float32)
    b2 = b2.at[:, :H].set(p["b2h"])
    b2 = b2.at[:, H:H + O].set(p["b2o"])

    return {"w1x": w1[:I, :].astype(compute_dtype),
            "w1s": w1s.astype(compute_dtype),
            "b1": b1,                       # biases stay f32 (added post-MXU)
            "w2": w2.astype(compute_dtype),
            "b2": b2}


# ----------------------------------------------------------------------------
# Wrappers
# ----------------------------------------------------------------------------
def rnn_forward_seq(x_seq, h0, fused, hidden_size, output_size):
    """x_seq: (T, B, I), h0: (B, H) -> (log_probs (T, B, O), final_hidden (B, H))."""
    T, B, I = x_seq.shape
    H, O = hidden_size, output_size
    N1 = fused["w1x"].shape[1]
    N2 = fused["w2"].shape[1]
    dt = fused["w1x"].dtype

    # Pad batch to a multiple of 16 sublanes (bf16 sublane tile) so every MXU
    # pass and every store is full-vreg.
    Bp = _round_up(max(B, 16), 16)
    x_p = jnp.zeros((T, Bp, I), dt).at[:, :B, :].set(x_seq.astype(dt))

    # Initial hidden embedded in the (Bp, N2) state slab (lanes [0, H)).
    h0_slab = jnp.zeros((Bp, N2), jnp.float32).at[:B, :H].set(h0)

    flops = 2 * T * Bp * (I * N1 + N2 * N1 + N1 * N2)
    transcendentals = T * Bp * (N2 + 1)            # exp over the slab + log per row
    bytes_accessed = (2 * T * Bp * I                       # x (bf16)
                      + 4 * Bp * N2                        # h0 slab
                      + 2 * (I * N1 + N2 * N1 + N1 * N2)   # bf16 weights (once)
                      + 4 * (N1 + N2)                      # biases
                      + 4 * T * Bp * N2)                   # output slabs
    cost = pl.CostEstimate(flops=flops, transcendentals=transcendentals,
                           bytes_accessed=bytes_accessed)

    kernel = functools.partial(rnn_seq_kernel, hidden_size=H, output_size=O)
    const2 = lambda t: (0, 0)

    grid_spec = pltpu.PrefetchScalarGridSpec(
        num_scalar_prefetch=0,
        grid=(T,),
        in_specs=[
            pl.BlockSpec((1, Bp, I), lambda t: (t, 0, 0)),   # x_t, streamed
            pl.BlockSpec((Bp, N2), const2),                  # h0 slab, resident
            pl.BlockSpec((I, N1), const2),                   # w1x, resident
            pl.BlockSpec((N2, N1), const2),                  # w1s, resident
            pl.BlockSpec((1, N1), const2),                   # b1, resident
            pl.BlockSpec((N1, N2), const2),                  # w2, resident
            pl.BlockSpec((1, N2), const2),                   # b2, resident
        ],
        out_specs=pl.BlockSpec((1, Bp, N2), lambda t: (t, 0, 0)),
        scratch_shapes=[pltpu.VMEM((Bp, N2), jnp.float32)],  # carried state slab
    )

    out = pl.pallas_call(
        kernel,
        out_shape=jax.ShapeDtypeStruct((T, Bp, N2), jnp.float32),
        grid_spec=grid_spec,
        compiler_params=pltpu.CompilerParams(
            dimension_semantics=("arbitrary",)),    # recurrent (sequential) axis
        cost_estimate=cost,
    )(x_p, h0_slab, fused["w1x"], fused["w1s"], fused["b1"],
      fused["w2"], fused["b2"])

    log_probs = out[:, :B, H:H + O]
    final_hidden = out[T - 1, :B, :H]
    return log_probs, final_hidden


def rnn_forward(x, h, fused, hidden_size, output_size):
    """One module forward() step: (B, I), (B, H) -> (log_probs (B, O), hidden (B, H))."""
    log_probs, new_hidden = rnn_forward_seq(x[None], h, fused,
                                            hidden_size, output_size)
    return log_probs[0], new_hidden


# ----------------------------------------------------------------------------
# Synthetic parameters + pure-JAX references
# ----------------------------------------------------------------------------
def init_params(key, input_size, hidden_size, output_size):
    """Deterministic synthetic parameters (same shapes as the PyTorch module,
    stored as (in_features, out_features) so y = x @ W + b)."""
    D = input_size + hidden_size
    H2 = hidden_size * 2
    ks = jax.random.split(key, 8)

    def lin(k, fan_in, fan_out):
        bound = 1.0 / jnp.sqrt(jnp.float32(fan_in))
        return jax.random.uniform(k, (fan_in, fan_out), jnp.float32, -bound, bound)

    return {
        "w1h": lin(ks[0], D, H2),
        "b1h": jax.random.uniform(ks[1], (1, H2), jnp.float32, -0.05, 0.05),
        "w2h": lin(ks[2], H2, hidden_size),
        "b2h": jax.random.uniform(ks[3], (1, hidden_size), jnp.float32, -0.05, 0.05),
        "w1o": lin(ks[4], D, H2),
        "b1o": jax.random.uniform(ks[5], (1, H2), jnp.float32, -0.05, 0.05),
        "w2o": lin(ks[6], H2, output_size),
        "b2o": jax.random.uniform(ks[7], (1, output_size), jnp.float32, -0.05, 0.05),
    }


def reference_step(x, h, p):
    """Exact f32 equivalent of the PyTorch module's forward()."""
    combined = jnp.concatenate([x, h], axis=1)
    h1 = jnp.maximum(combined @ p["w1h"] + p["b1h"], 0.0)
    hidden = h1 @ p["w2h"] + p["b2h"]
    o1 = jnp.maximum(combined @ p["w1o"] + p["b1o"], 0.0)
    logits = o1 @ p["w2o"] + p["b2o"]
    return jax.nn.log_softmax(logits, axis=1), hidden


def reference_step_matched(x, h, p, dt=jnp.bfloat16):
    """Same math with the kernel's bf16 MXU-operand / f32-accumulate rounding."""
    comb = jnp.concatenate([x, h], axis=1).astype(dt)
    h1 = jnp.maximum(jnp.dot(comb, p["w1h"].astype(dt),
                             preferred_element_type=jnp.float32) + p["b1h"], 0.0)
    o1 = jnp.maximum(jnp.dot(comb, p["w1o"].astype(dt),
                             preferred_element_type=jnp.float32) + p["b1o"], 0.0)
    hidden = jnp.dot(h1.astype(dt), p["w2h"].astype(dt),
                     preferred_element_type=jnp.float32) + p["b2h"]
    logits = jnp.dot(o1.astype(dt), p["w2o"].astype(dt),
                     preferred_element_type=jnp.float32) + p["b2o"]
    return jax.nn.log_softmax(logits, axis=1), hidden


def reference_seq(x_seq, h0, p, step_fn):
    outs, h = [], h0
    for t in range(x_seq.shape[0]):
        lp, h = step_fn(x_seq[t], h, p)
        outs.append(lp)
    return jnp.stack(outs), h


if __name__ == "__main__":
    input_size, hidden_size, output_size = 16, 32, 8
    batch, seq_len = 2, 8

    key = jax.random.PRNGKey(0)
    k_x, k_p = jax.random.split(key, 2)

    x_seq = jax.random.normal(k_x, (seq_len, batch, input_size), jnp.float32)
    h0 = jnp.zeros((batch, hidden_size), jnp.float32)      # init_hidden, broadcast
    params = init_params(k_p, input_size, hidden_size, output_size)
    fused = fuse_params(params, input_size, hidden_size, output_size)

    # --- Full sequence: recurrence runs inside ONE pallas_call (grid=(T,)). ---
    lp_seq, h_final = rnn_forward_seq(x_seq, h0, fused, hidden_size, output_size)
    jax.block_until_ready((lp_seq, h_final))

    ref_lp_seq, ref_h_final = reference_seq(x_seq, h0, params, reference_step_matched)
    assert lp_seq.shape == (seq_len, batch, output_size)
    assert h_final.shape == (batch, hidden_size)
    assert jnp.allclose(lp_seq, ref_lp_seq, atol=1e-3, rtol=1e-3), \
        float(jnp.max(jnp.abs(lp_seq - ref_lp_seq)))
    assert jnp.allclose(h_final, ref_h_final, atol=1e-3, rtol=1e-3), \
        float(jnp.max(jnp.abs(h_final - ref_h_final)))

    # --- Single step: the exact PyTorch forward() semantics (T=1). ---
    lp1, hid1 = rnn_forward(x_seq[0], h0, fused, hidden_size, output_size)
    jax.block_until_ready((lp1, hid1))
    ref_lp1, ref_hid1 = reference_step(x_seq[0], h0, params)    # true f32 reference
    assert lp1.shape == (batch, output_size)
    assert hid1.shape == (batch, hidden_size)
    assert jnp.allclose(lp1, ref_lp1, atol=2e-2, rtol=2e-2)     # bf16-operand tolerance
    assert jnp.allclose(hid1, ref_hid1, atol=2e-2, rtol=2e-2)

    print("KERNEL_OK")
</pallas_src>

<mosaic_0001>
module attributes {stable_mosaic.version = 11 : i64} {
  func.func @rnn_seq_kernel(%arg0: i32, %arg1: memref<1x16x16xbf16, #tpu.memory_space<vmem>>, %arg2: memref<16x128xf32, #tpu.memory_space<vmem>>, %arg3: memref<16x128xbf16, #tpu.memory_space<vmem>>, %arg4: memref<128x128xbf16, #tpu.memory_space<vmem>>, %arg5: memref<1x128xf32, #tpu.memory_space<vmem>>, %arg6: memref<128x128xbf16, #tpu.memory_space<vmem>>, %arg7: memref<1x128xf32, #tpu.memory_space<vmem>>, %arg8: memref<1x16x128xf32, #tpu.memory_space<vmem>>, %arg9: memref<16x128xf32, #tpu.memory_space<vmem>>) attributes {dimension_semantics = [#tpu.dimension_semantics<arbitrary>], iteration_bounds = array<i64: 8>, scalar_prefetch = 0 : i64, scratch_operands = 1 : i64, tpu.core_type = #tpu.core_type<tc>, window_params = [{transform_indices = @transform_0, window_bounds = array<i64: 1, 16, 16>}, {pipeline_mode = #tpu.pipeline_mode<synchronous>, transform_indices = @transform_1, window_bounds = array<i64: 16, 128>}, {pipeline_mode = #tpu.pipeline_mode<synchronous>, transform_indices = @transform_2, window_bounds = array<i64: 16, 128>}, {pipeline_mode = #tpu.pipeline_mode<synchronous>, transform_indices = @transform_3, window_bounds = array<i64: 128, 128>}, {pipeline_mode = #tpu.pipeline_mode<synchronous>, transform_indices = @transform_4, window_bounds = array<i64: 1, 128>}, {pipeline_mode = #tpu.pipeline_mode<synchronous>, transform_indices = @transform_5, window_bounds = array<i64: 128, 128>}, {pipeline_mode = #tpu.pipeline_mode<synchronous>, transform_indices = @transform_6, window_bounds = array<i64: 1, 128>}, {transform_indices = @transform_7, window_bounds = array<i64: 1, 16, 128>}]} {
    %c0_i32 = arith.constant 0 : i32
    %0 = arith.cmpi eq, %arg0, %c0_i32 : i32
    %1 = arith.extui %0 : i1 to i32
    %c0_i32_0 = arith.constant 0 : i32
    %2 = arith.cmpi ne, %1, %c0_i32_0 : i32
    scf.if %2 {
      %c0_27 = arith.constant 0 : index
      %c0_28 = arith.constant 0 : index
      %49 = vector.load %arg2[%c0_27, %c0_28] : memref<16x128xf32, #tpu.memory_space<vmem>>, vector<16x128xf32>
      %c0_29 = arith.constant 0 : index
      %c0_30 = arith.constant 0 : index
      %50 = vector.load %arg9[%c0_29, %c0_30] : memref<16x128xf32, #tpu.memory_space<vmem>>, vector<16x128xf32>
      tpu.vector_store %arg9[%c0_29, %c0_30], %49 {strides = array<i32>} : memref<16x128xf32, #tpu.memory_space<vmem>>, vector<16x128xf32>,
    } else {
    }
    %c0 = arith.constant 0 : index
    %c0_1 = arith.constant 0 : index
    %c0_2 = arith.constant 0 : index
    %3 = vector.load %arg1[%c0, %c0_1, %c0_2] : memref<1x16x16xbf16, #tpu.memory_space<vmem>>, vector<1x16x16xbf16>
    %4 = vector.shape_cast %3 : vector<1x16x16xbf16> to vector<16x16xbf16>
    %c0_3 = arith.constant 0 : index
    %c0_4 = arith.constant 0 : index
    %5 = vector.load %arg9[%c0_3, %c0_4] : memref<16x128xf32, #tpu.memory_space<vmem>>, vector<16x128xf32>
    %6 = arith.truncf %5 : vector<16x128xf32> to vector<16x128xbf16>
    %c0_5 = arith.constant 0 : index
    %c0_6 = arith.constant 0 : index
    %7 = vector.load %arg3[%c0_5, %c0_6] : memref<16x128xbf16, #tpu.memory_space<vmem>>, vector<16x128xbf16>
    %cst = arith.constant dense<0.000000e+00> : vector<16x128xf32>
    %8 = tpu.matmul %4, %7, %cst {dimension_numbers = #tpu.dot_dimension_numbers<[1], [0], [0], [1], [0, 0, 1, 1], [], []>} : vector<16x16xbf16>, vector<16x128xbf16>, vector<16x128xf32> -> vector<16x128xf32>
    %c0_7 = arith.constant 0 : index
    %c0_8 = arith.constant 0 : index
    %9 = vector.load %arg4[%c0_7, %c0_8] : memref<128x128xbf16, #tpu.memory_space<vmem>>, vector<128x128xbf16>
    %cst_9 = arith.constant dense<0.000000e+00> : vector<16x128xf32>
    %10 = tpu.matmul %6, %9, %cst_9 {dimension_numbers = #tpu.dot_dimension_numbers<[1], [0], [0], [1], [0, 0, 1, 1], [], []>} : vector<16x128xbf16>, vector<128x128xbf16>, vector<16x128xf32> -> vector<16x128xf32>
    %11 = arith.addf %8, %10 : vector<16x128xf32>
    %c0_10 = arith.constant 0 : index
    %c0_11 = arith.constant 0 : index
    %12 = vector.load %arg5[%c0_10, %c0_11] : memref<1x128xf32, #tpu.memory_space<vmem>>, vector<1x128xf32>
    %13 = vector.broadcast %12 : vector<1x128xf32> to vector<16x128xf32>
    %14 = arith.addf %11, %13 : vector<16x128xf32>
    %cst_12 = arith.constant 0.000000e+00 : f32
    %15 = vector.broadcast %cst_12 : f32 to vector<16x128xf32>
    %16 = arith.maximumf %14, %15 : vector<16x128xf32>
    %17 = arith.truncf %16 : vector<16x128xf32> to vector<16x128xbf16>
    %c0_13 = arith.constant 0 : index
    %c0_14 = arith.constant 0 : index
    %18 = vector.load %arg6[%c0_13, %c0_14] : memref<128x128xbf16, #tpu.memory_space<vmem>>, vector<128x128xbf16>
    %cst_15 = arith.constant dense<0.000000e+00> : vector<16x128xf32>
    %19 = tpu.matmul %17, %18, %cst_15 {dimension_numbers = #tpu.dot_dimension_numbers<[1], [0], [0], [1], [0, 0, 1, 1], [], []>} : vector<16x128xbf16>, vector<128x128xbf16>, vector<16x128xf32> -> vector<16x128xf32>
    %c0_16 = arith.constant 0 : index
    %c0_17 = arith.constant 0 : index
    %20 = vector.load %arg7[%c0_16, %c0_17] : memref<1x128xf32, #tpu.memory_space<vmem>>, vector<1x128xf32>
    %21 = vector.broadcast %20 : vector<1x128xf32> to vector<16x128xf32>
    %22 = arith.addf %19, %21 : vector<16x128xf32>
    %c0_18 = arith.constant 0 : index
    %c0_19 = arith.constant 0 : index
    %23 = vector.load %arg9[%c0_18, %c0_19] : memref<16x128xf32, #tpu.memory_space<vmem>>, vector<16x128xf32>
    tpu.vector_store %arg9[%c0_18, %c0_19], %22 {strides = array<i32>} : memref<16x128xf32, #tpu.memory_space<vmem>>, vector<16x128xf32>,
    %24 = tpu.iota {dimensions = array<i32: 1>} : vector<16x128xi32>
    %c32_i32 = arith.constant 32 : i32
    %25 = vector.broadcast %c32_i32 : i32 to vector<16x128xi32>
    %26 = arith.cmpi sge, %24, %25 : vector<16x128xi32>
    %c40_i32 = arith.constant 40 : i32
    %27 = vector.broadcast %c40_i32 : i32 to vector<16x128xi32>
    %28 = arith.cmpi slt, %24, %27 : vector<16x128xi32>
    %29 = arith.andi %26, %28 : vector<16x128xi1>
    %cst_20 = arith.constant 0xFF800000 : f32
    %30 = vector.broadcast %cst_20 : f32 to vector<16x128xf32>
    %31 = arith.select %29, %22, %30 : vector<16x128xi1>, vector<16x128xf32>
    %cst_21 = arith.constant dense<0xFF800000> : vector<16xf32>
    %32 = vector.multi_reduction <maximumf>, %31, %cst_21 [1] : vector<16x128xf32> to vector<16xf32>
    %33 = vector.shape_cast %32 : vector<16xf32> to vector<16x1xf32>
    %34 = vector.broadcast %33 : vector<16x1xf32> to vector<16x128xf32>
    %35 = arith.subf %22, %34 : vector<16x128xf32>
    %cst_22 = arith.constant 0xFF800000 : f32
    %36 = vector.broadcast %cst_22 : f32 to vector<16x128xf32>
    %37 = arith.select %29, %35, %36 : vector<16x128xi1>, vector<16x128xf32>
    %38 = math.exp %37 : vector<16x128xf32>
    %cst_23 = arith.constant dense<0.000000e+00> : vector<16xf32>
    %39 = vector.multi_reduction <add>, %38, %cst_23 [1] : vector<16x128xf32> to vector<16xf32>
    %40 = vector.shape_cast %39 : vector<16xf32> to vector<16x1xf32>
    %41 = math.log %40 : vector<16x1xf32>
    %42 = arith.addf %33, %41 : vector<16x1xf32>
    %43 = vector.broadcast %42 : vector<16x1xf32> to vector<16x128xf32>
    %44 = arith.subf %22, %43 : vector<16x128xf32>
    %45 = arith.select %29, %44, %22 : vector<16x128xi1>, vector<16x128xf32>
    %c0_24 = arith.constant 0 : index
    %c0_25 = arith.constant 0 : index
    %c0_26 = arith.constant 0 : index
    %46 = vector.load %arg8[%c0_24, %c0_25, %c0_26] : memref<1x16x128xf32, #tpu.memory_space<vmem>>, vector<1x16x128xf32>
    %47 = vector.shape_cast %46 : vector<1x16x128xf32> to vector<16x128xf32>
    %48 = vector.shape_cast %45 : vector<16x128xf32> to vector<1x16x128xf32>
    tpu.vector_store %arg8[%c0_24, %c0_25, %c0_26], %48 {strides = array<i32>} : memref<1x16x128xf32, #tpu.memory_space<vmem>>, vector<1x16x128xf32>,
    return
  }
  func.func @transform_0(%arg0: i32) -> (i32, i32, i32) {
    %c0_i32 = arith.constant 0 : i32
    %c0_i32_0 = arith.constant 0 : i32
    %c0_i32_1 = arith.constant 0 : i32
    return %arg0, %c0_i32, %c0_i32_0 : i32, i32, i32
  }
  func.func @transform_1(%arg0: i32) -> (i32, i32) {
    %c0_i32 = arith.constant 0 : i32
    %c0_i32_0 = arith.constant 0 : i32
    %c0_i32_1 = arith.constant 0 : i32
    return %c0_i32, %c0_i32_0 : i32, i32
  }
  func.func @transform_2(%arg0: i32) -> (i32, i32) {
    %c0_i32 = arith.constant 0 : i32
    %c0_i32_0 = arith.constant 0 : i32
    %c0_i32_1 = arith.constant 0 : i32
    return %c0_i32, %c0_i32_0 : i32, i32
  }
  func.func @transform_3(%arg0: i32) -> (i32, i32) {
    %c0_i32 = arith.constant 0 : i32
    %c0_i32_0 = arith.constant 0 : i32
    %c0_i32_1 = arith.constant 0 : i32
    return %c0_i32, %c0_i32_0 : i32, i32
  }
  func.func @transform_4(%arg0: i32) -> (i32, i32) {
    %c0_i32 = arith.constant 0 : i32
    %c0_i32_0 = arith.constant 0 : i32
    %c0_i32_1 = arith.constant 0 : i32
    return %c0_i32, %c0_i32_0 : i32, i32
  }
  func.func @transform_5(%arg0: i32) -> (i32, i32) {
    %c0_i32 = arith.constant 0 : i32
    %c0_i32_0 = arith.constant 0 : i32
    %c0_i32_1 = arith.constant 0 : i32
    return %c0_i32, %c0_i32_0 : i32, i32
  }
  func.func @transform_6(%arg0: i32) -> (i32, i32) {
    %c0_i32 = arith.constant 0 : i32
    %c0_i32_0 = arith.constant 0 : i32
    %c0_i32_1 = arith.constant 0 : i32
    return %c0_i32, %c0_i32_0 : i32, i32
  }
  func.func @transform_7(%arg0: i32) -> (i32, i32, i32) {
    %c0_i32 = arith.constant 0 : i32
    %c0_i32_0 = arith.constant 0 : i32
    %c0_i32_1 = arith.constant 0 : i32
    return %arg0, %c0_i32, %c0_i32_0 : i32, i32, i32
  }
}

</mosaic_0001>

<bundles_post_ra>
// kernel: tpu_custom_call.1
= control target key start
LH: loop header
LB: loop body
LE: loop exit
PB: predicated region body
PF: predicated region fallthrough
CT: control target
= control target key end

     0   :  { %12 = vsyncpa [#allocation4], 0  ;;  %s1627_s0 = inlined_call_operand.hbm [shape: bf16[8,16,16], index: 0, kind: input, shape index: {}]   ;;  %s1628_s1 = inlined_call_operand.hbm [shape: f32[16,128], index: 1, kind: input, shape index: {}]   ;;  %s1629_s2 = inlined_call_operand.hbm [shape: bf16[16,128], index: 2, kind: input, shape index: {}]   ;;  %s1630_s3 = inlined_call_operand.hbm [shape: bf16[128,128], index: 3, kind: input, shape index: {}]   ;;  %s1631_s4 = inlined_call_operand.vmem [shape: f32[1,128], index: 4, kind: input, shape index: {}]   ;;  %s1632_s5 = inlined_call_operand.hbm [shape: bf16[128,128], index: 5, kind: input, shape index: {}]   ;;  %s1633_s6 = inlined_call_operand.vmem [shape: f32[1,128], index: 6, kind: input, shape index: {}]   ;;  %s1634_s7 = inlined_call_operand.hbm [shape: f32[8,16,128], index: 7, kind: output, shape index: {}]  }
   0x1   :  { %14 = vsyncpa [#allocation4 + $0x1], 0 }
   0x2   :  { %15 = vsyncpa [#allocation7], 0 }
   0x3   :  { %16 = vsyncpa [#allocation10], 0 }
   0x4   :  { %17 = vsyncpa [#allocation5], 0 }
   0x5   :  { %19 = vsyncpa [#allocation5 + $0x1], 0  ;;  %s1323_s24 = smov 0   ;;  %s1325_s25 = smov 0  }
   0x6   :  { %s1327_s26 = smov 0   ;;  %s1329_s27 = smov 0  }
   0x7 LB: > { %1640 = sst [smem:[#allocation17_spill]] %s1255_s24  ;;  %s1344_s28 = sadd.s32 4294967295, %s1267_s27   ;;  %s1267_s27 = sphi %s1329_s27, %s1665_s27   ;;  %s1263_s26 = sphi %s1327_s26, %s1664_s26   ;;  %s1259_s25 = sphi %s1325_s25, %s1663_s25   ;;  %s1255_s24 = sphi %s1323_s24, %s1662_s24  }
   0x8   : > { %s818_s29 = sadd.s32 4294967294, %s1267_s27   ;;  %p45_p0 = scmp.ne.s32.totalorder %s1259_s25, %s1255_s24 }
   0x9   : > { %p1635_p1 = scmp.eq.s32.totalorder %s1344_s28, 0  ;;  %p201_p3 = scmp.eq.s32.totalorder %s818_s29, 7 }
   0xa   : > { %p819_p5 = scmp.ge.s32.totalorder %s1267_s27, 1  ;;  %p208_p7 = scmp.lt.s32.totalorder %s1267_s27, 9 }
   0xb   : > { %p1353_p4 = por %p1635_p1, %p45_p0  ;;  %p1358_p6 = por %p201_p3, %p45_p0 }
   0xc   : > { %p1364_p9 = pnand %p819_p5, %p208_p7  ;;  %s1269_s10 = smov [#allocation6]  }
   0xd   : > { %s1641_s30 = scalar_select %p1353_p4, 1, 0 }
   0xe   : > { %s1642_s8 = scalar_select %p1358_p6, 1, 0 }
   0xf   : > { %s1644_s9 = scalar_select %p1364_p9, 1, 0 }
  0x10   : > { %1643 = sst [smem:[#allocation18_spill]] %s1642_s8  ;;  %s220_s11 = sshll.u32 %s1269_s10, 4  ;;  %s221_s11 = int_to_ptr.vmem [resolvable:$true] %s220_s11 }
  0x11   : > { %p950_p10 = pneg %p1364_p9  ;;  %s1270_s13 = smov [#allocation9]  }
  0x12   : > { %s246_s14 = sshll.u32 %s1270_s13, 4  ;;  %s1051_s17 = scalar_lea.hbm %s1628_s1, 256  ;;  %s247_s14 = int_to_ptr.vmem [resolvable:$true] %s246_s14 }
  0x13   : > { %p1372_p11 = pnand %p950_p10, %p1635_p1  ;;  %p1052_p12 = scmp.ne.s32.totalorder %s1628_s1, %s1051_s17 }
  0x14   : > { %p1058_p5 = scmp.lt.u32.totalorder %s1051_s17, %s1628_s1 }
  0x15   : > { %p1384_p13 = pneg %p1372_p11 }
  0x17   : > { %p1054_p0 = pnand %p1384_p13, %p1052_p12 }
  0x19   : > { %p1055_p3 = pneg %p1054_p0 }
  0x1b   : > { %p1060_p7 = pnand %p1058_p5, %p1055_p3 }
  0x1d   : > { %1063 = shalt.err (!%p1060_p7)
}
  0x1e   : > { %s1064_s23 = scalar_lea.vmem %s221_s11, 256  ;;  %p1072_p2 = scmp.lt.s32.totalorder %s221_s11, %s221_s11 }
  0x1f   : > { %p1065_p10 = scmp.ne.s32.totalorder %s221_s11, %s1064_s23  ;;  %p1073_p6 = scmp.lt.s32.totalorder %s1064_s23, %s1064_s23 }
  0x21   : > { %p1067_p8 = pnand %p1065_p10, %p1384_p13  ;;  %p1074_p4 = por %p1073_p6, %p1072_p2 }
  0x23   : > { %p1068_p1 = pneg %p1067_p8 }
  0x25   : > { %p1075_p9 = pnand %p1074_p4, %p1068_p1 }
  0x27   : > { %1078 = shalt.err (!%p1075_p9)
}
  0x28   : > { %s1271_s29 = smov 128   ;;  %s1272_s10 = smov 8  }
  0x29   : > { %953 = dma.hbm_to_vmem [thread:$0]  (!%p1372_p11), %s1628_s1, 256, %s221_s11, [#allocation7], %s1271_s29, %s1271_s29, %s1272_s10  }
  0x2a   : > { %s1273_s16 = smov [#allocation8]   ;;  %s1079_s21 = scalar_lea.hbm %s1630_s3, 1024 }
  0x2b   : > { %s233_s17 = sshll.u32 %s1273_s16, 4  ;;  %p1080_p1 = scmp.ne.s32.totalorder %s1630_s3, %s1079_s21  ;;  %s234_s17 = int_to_ptr.vmem [resolvable:$true] %s233_s17 }
  0x2c   : > { %p1086_p6 = scmp.lt.u32.totalorder %s1079_s21, %s1630_s3 }
  0x2d   : > { %p1082_p2 = pnand %p1080_p1, %p1384_p13 }
  0x2f   : > { %p1083_p4 = pneg %p1082_p2 }
  0x31   : > { %p1088_p8 = pnand %p1086_p6, %p1083_p4 }
  0x33   : > { %1091 = shalt.err (!%p1088_p8)
}
  0x34   : > { %s1092_s11 = scalar_lea.vmem %s247_s14, 1024  ;;  %p1100_p3 = scmp.lt.s32.totalorder %s247_s14, %s247_s14 }
  0x35   : > { %p1093_p9 = scmp.ne.s32.totalorder %s247_s14, %s1092_s11  ;;  %p1101_p5 = scmp.lt.s32.totalorder %s1092_s11, %s1092_s11 }
  0x37   : > { %p1095_p12 = pnand %p1093_p9, %p1384_p13  ;;  %p1102_p7 = por %p1101_p5, %p1100_p3 }
  0x39   : > { %p1096_p0 = pneg %p1095_p12 }
  0x3b   : > { %p1103_p10 = pnand %p1102_p7, %p1096_p0 }
  0x3d   : > { %1106 = shalt.err (!%p1103_p10)
}
  0x3e   : > { %s1274_s29 = smov 64   ;;  %s1275_s10 = smov 4  }
  0x3f   : > { %959 = dma.hbm_to_vmem [thread:$0]  (!%p1372_p11), %s1630_s3, 1024, %s247_s14, [#allocation10], %s1274_s29, %s1274_s29, %s1275_s10  }
  0x40   : > { %s1107_s16 = scalar_lea.hbm %s1629_s2, 128 }
  0x41   : > { %p1108_p1 = scmp.ne.s32.totalorder %s1629_s2, %s1107_s16  ;;  %p1114_p6 = scmp.lt.u32.totalorder %s1107_s16, %s1629_s2 }
  0x43   : > { %p1110_p2 = pnand %p1108_p1, %p1384_p13 }
  0x45   : > { %p1111_p4 = pneg %p1110_p2 }
  0x47   : > { %p1116_p8 = pnand %p1114_p6, %p1111_p4 }
  0x49   : > { %1119 = shalt.err (!%p1116_p8)
}
  0x4a   : > { %s1120_s23 = scalar_lea.vmem %s234_s17, 128  ;;  %p1128_p3 = scmp.lt.s32.totalorder %s234_s17, %s234_s17 }
  0x4b   : > { %p1121_p9 = scmp.ne.s32.totalorder %s234_s17, %s1120_s23  ;;  %p1129_p5 = scmp.lt.s32.totalorder %s1120_s23, %s1120_s23 }
  0x4d   : > { %p1123_p12 = pnand %p1121_p9, %p1384_p13  ;;  %p1130_p7 = por %p1129_p5, %p1128_p3 }
  0x4f   : > { %p1124_p0 = pneg %p1123_p12 }
  0x51   : > { %p1131_p10 = pnand %p1130_p7, %p1124_p0 }
  0x53   : > { %1134 = shalt.err (!%p1131_p10)
}
  0x54   : > { %956 = dma.hbm_to_vmem [thread:$0]  (!%p1372_p11), %s1629_s2, 128, %s234_s17, [#allocation7], %s1274_s29, %s1274_s29, %s1275_s10  }
  0x55   : > { %s1276_s24 = smov [#allocation11]   ;;  %s1135_s16 = scalar_lea.hbm %s1632_s5, 1024 }
  0x56   : > { %s262_s8 = sshll.u32 %s1276_s24, 4  ;;  %p1136_p1 = scmp.ne.s32.totalorder %s1632_s5, %s1135_s16  ;;  %s263_s8 = int_to_ptr.vmem [resolvable:$true] %s262_s8 }
  0x57   : > { %p1142_p6 = scmp.lt.u32.totalorder %s1135_s16, %s1632_s5 }
  0x58   : > { %p1138_p2 = pnand %p1136_p1, %p1384_p13 }
  0x5a   : > { %p1139_p4 = pneg %p1138_p2 }
  0x5c   : > { %p1144_p8 = pnand %p1142_p6, %p1139_p4 }
  0x5e   : > { %1147 = shalt.err (!%p1144_p8)
}
  0x5f   : > { %s1148_s17 = scalar_lea.vmem %s263_s8, 1024  ;;  %p1156_p3 = scmp.lt.s32.totalorder %s263_s8, %s263_s8 }
  0x60   : > { %p1149_p9 = scmp.ne.s32.totalorder %s263_s8, %s1148_s17  ;;  %p1157_p5 = scmp.lt.s32.totalorder %s1148_s17, %s1148_s17 }
  0x62   : > { %p1151_p12 = pnand %p1149_p9, %p1384_p13  ;;  %p1158_p7 = por %p1157_p5, %p1156_p3 }
  0x64   : > { %p1152_p0 = pneg %p1151_p12 }
  0x66   : > { %p1159_p10 = pnand %p1158_p7, %p1152_p0 }
  0x68   : > { %1162 = shalt.err (!%p1159_p10)
}
  0x69   : > { %962 = dma.hbm_to_vmem [thread:$0]  (!%p1372_p11), %s1632_s5, 1024, %s263_s8, [#allocation10], %s1274_s29, %s1274_s29, %s1275_s10  }
  0x6a   : > { %s1464_s20 = sadd.s32 1, %s1267_s27   ;;  %s32_s12 = sadd.s32 1, %s1263_s26 }
  0x6b   : > { %s29_s11 = ssub.s32 %s1267_s27, %s1464_s20  ;;  %p39_p13 = scmp.ne.s32.totalorder %s1263_s26, %s1259_s25 }
  0x6c   : > { %p30_p1 = scmp.eq.s32.totalorder %s29_s11, 0  ;;  %p40_p2 = scmp.eq.s32.totalorder %s1267_s27, 0 }
  0x6d   : > { %p1647_p4 = scmp.eq.s32.totalorder %s1344_s28, 7  ;;  %p975_p8 = scmp.lt.s32.totalorder %s1267_s27, 8 }
  0x6e   : > { %s1480_s13 = scalar_select %p30_p1, %s1263_s26, %s32_s12  }
  0x6f   : > { %p1474_p6 = por %p1647_p4, %p39_p13  ;;  %p41_p9 = por %p40_p2, %p39_p13 }
  0x70   : > { %s279_s15 = sand.u32 1, %s1263_s26   ;;  %s862_s8 = sshll.u32 %s1267_s27, 7 }
  0x71   : > { %s825_s16 = sshll.u32 %s279_s15, 3  ;;  %s1487_s21 = scalar_lea.hbm %s1627_s0, %s862_s8 }
  0x72   : > { %s283_s22 = scalar_lea.vmem [#allocation3], %s825_s16  ;;  %p1491_p11 = pnand %p975_p8, %p41_p9 }
  0x73   : > { %s290_s17 = sshll.u32 %s283_s22, 4  ;;  %s1495_s14 = scalar_lea.sflag [#allocation4], %s279_s15  ;;  %s1489_s17 = int_to_ptr.vmem [resolvable:$true] %s290_s17 }
  0x74   : > { %s1163_s12 = scalar_lea.hbm %s1487_s21, 128  ;;  %p1165_p0 = pneg %p1491_p11 }
  0x75   : > { %p1164_p12 = scmp.ne.s32.totalorder %s1487_s21, %s1163_s12  ;;  %s1168_s8 = scalar_lea.hbm %s1627_s0, 1024 }
  0x76   : > { %p1169_p7 = scmp.lt.u32.totalorder %s1487_s21, %s1627_s0  ;;  %p1170_p10 = scmp.lt.u32.totalorder %s1168_s8, %s1163_s12 }
  0x77   : > { %p1166_p3 = pnand %p1165_p0, %p1164_p12  ;;  %p1172_p1 = scmp.lt.u32.totalorder %s1163_s12, %s1487_s21 }
  0x78   : > { %p1171_p13 = por %p1170_p10, %p1169_p7 }
  0x79   : > { %p1167_p5 = pneg %p1166_p3 }
  0x7a   : > { %p1173_p2 = por %p1172_p1, %p1171_p13 }
  0x7c   : > { %p1174_p4 = pnand %p1173_p2, %p1167_p5 }
  0x7e   : > { %1177 = shalt.err (!%p1174_p4)
}
  0x7f   : > { %s1178_s15 = scalar_lea.vmem %s1489_s17, 128  ;;  %s1277_s22 = smov [#allocation3]  }
  0x80   : > { %p1179_p8 = scmp.ne.s32.totalorder %s1489_s17, %s1178_s15  ;;  %s1183_s11 = sshll.u32 %s1277_s22, 4  ;;  %s1184_s11 = int_to_ptr.vmem [resolvable:$false] %s1183_s11 }
  0x81   : > { %s1185_s16 = scalar_lea.vmem %s1184_s11, 256  ;;  %p1186_p3 = scmp.lt.s32.totalorder %s1489_s17, %s1184_s11 }
  0x82   : > { %p1181_p9 = pnand %p1179_p8, %p1165_p0  ;;  %p1187_p7 = scmp.lt.s32.totalorder %s1185_s16, %s1178_s15 }
  0x84   : > { %p1182_p12 = pneg %p1181_p9  ;;  %p1188_p10 = por %p1187_p7, %p1186_p3 }
  0x86   : > { %p1189_p13 = pnand %p1188_p10, %p1182_p12 }
  0x88   : > { %1192 = shalt.err (!%p1189_p13)
}
  0x89   : > { %966 = dma.hbm_to_vmem [thread:$0]  (!%p1491_p11), %s1487_s21, 128, %s1489_s17, %s1495_s14, %s1274_s29, %s1274_s29, %s1275_s10  }
  0x8a   : > { %p1650_p0 = scmp.ne.s32.totalorder %s1644_s9, 0 }
  0x8b   : > { %s1529_s12 = sand.u32 (!%p1650_p0), 1, %s1259_s25   ;;  %p1651_p5 = scmp.ne.s32.totalorder (!%p1650_p0), %s1641_s30, 0 }
  0x8c   : > { %302 = sbr.rel (%p1650_p0) target bundleno = 970 (0x3ca), region = 48  ;;  %s829_s8 = sshll.u32 (!%p1650_p0), %s1529_s12, 3 }
  0x8d   : > { %s305_s18 = scalar_lea.sflag (!%p1650_p0), [#allocation4], %s1529_s12  ;;  %s308_s19 = scalar_lea.vmem (!%p1650_p0), [#allocation3], %s829_s8 }
  0x93   : > { %1238 = dma.done.wait (%p1651_p5), %s305_s18, 128  }
  0x94   : > { %1240 = vsyncadd (%p1651_p5), %s305_s18, 4294967168  ;;  %p1652_p1 = scmp.eq.s32.totalorder %s1344_s28, 0 }
  0x96   : > { %1242 = dma.done.wait (%p1652_p1), [#allocation7], 384   ;;  %p1653_p11 = pmov %p1652_p1 }
  0x97   : > { %p1654_p2 = pmov %p1652_p1 }
  0x98   : > { %1244 = vsyncadd (%p1653_p11), [#allocation7], 4294966912 }
  0x99   : > { %1246 = dma.done.wait (%p1654_p2), [#allocation10], 2048   ;;  %p1655_p4 = pmov %p1652_p1 }
  0x9a   : > { %s834_s9 = sshll.u32 %s1529_s12, 4  ;;  %p1656_p8 = scmp.ne.s32.totalorder %s1344_s28, 0 }
  0x9b   : > { %1248 = vsyncadd (%p1655_p4), [#allocation10], 4294965248  ;;  %s1546_s29 = scalar_lea.vmem [#allocation12], %s834_s9  ;;  %v360_v0 = vld [vmem:[#allocation6] sm:$0xff] (!%p1656_p8)  ;;  %v361_v1 = vld [vmem:[#allocation6 + $0x8] sm:$0xff] (!%p1656_p8) }
  0x9c   : > { %359 = sbr.rel (%p1656_p8) target bundleno = 163 (0xa3), region = 72  ;;  %362 = vst [vmem:[#allocation2] sm:$0xff] (!%p1656_p8), %v360_v0  ;;  %363 = vst [vmem:[#allocation2 + $0x8] sm:$0xff] (!%p1656_p8), %v361_v1 }
  0xa3 PF: > { %v1025_v2 = vld [vmem:[#allocation9] sm:$0xff]   ;;  %v1278_v3 = vmov 0.0   ;;  %v1026_v4 = vld [vmem:[#allocation9 + $0x8] sm:$0xff]   ;;  %vm1279_vm0 = vmmov 0   ;;  %v1027_v5 = vld [vmem:[#allocation9 + $0x10] sm:$0xff]   ;;  %vm487_vm1 = vcmask 130048   ;;  %v658_v40 = vlaneseq }
  0xa4   : > { %884 = vmatprep.subr.bf16.mxu0 %v1278_v3  ;;  %904 = vmatprep.subr.bf16.mxu1 %v1278_v3  ;;  %v1032_v6 = vld [vmem:[#allocation8] sm:$0xff]   ;;  %v1035_v9 = vld [vmem:[#allocation11] sm:$0xff]   ;;  %v1036_v10 = vld [vmem:[#allocation11 + $0x8] sm:$0xff]   ;;  %s863_s23 = sshll.u32 %s1344_s28, 8  ;;  %s707_s14 = sshll.u32 %s1546_s29, 4  ;;  %s1581_s14 = int_to_ptr.vmem [resolvable:$true] %s707_s14 }
  0xa5   : > { %885 = vmatpush3.bf16.msra.mxu0 %v1025_v2  ;;  %906 = vmatprep.mubr.msk.bf16.mxu1 %vm1279_vm0, %v1278_v3  ;;  %v1034_v7 = vld [vmem:[%s308_s19] sm:$0xff]   ;;  %v1037_v12 = vld [vmem:[#allocation11 + $0x10] sm:$0xff]   ;;  %v1030_v13 = vld [vmem:[#allocation9 + $0x28] sm:$0xff]   ;;  %v659_v41 = vand.u32 127, %v658_v40  ;;  %s1579_s11 = scalar_lea.hbm %s1634_s7, %s863_s23  ;;  %s694_s28 = scalar_lea.sflag [#allocation5], %s1529_s12 }
  0xa6   : > { %886 = vmatprep.subr.bf16.mxu0 %v1278_v3  ;;  %900 = vmatprep.mubr.msk.bf16.mxu0 %vm1279_vm0, %v1278_v3  ;;  %v1028_v8 = vld [vmem:[#allocation9 + $0x18] sm:$0xff]   ;;  %v1029_v11 = vld [vmem:[#allocation9 + $0x20] sm:$0xff]   ;;  %v1031_v15 = vld [vmem:[#allocation9 + $0x30] sm:$0xff]   ;;  %s1193_s16 = scalar_lea.vmem %s1581_s14, 256  ;;  %s1280_s8 = smov [#allocation12]  }
  0xa7   : > { %905 = vmatpush3.bf16.msra.mxu1 %v1032_v6  ;;  %v1038_v14 = vld [vmem:[#allocation11 + $0x18] sm:$0xff]   ;;  %v1039_v16 = vld [vmem:[#allocation11 + $0x20] sm:$0xff]   ;;  %v366_v18 = vld [vmem:[#allocation2] sm:$0xff]  ;;  %vm660_vm2 = vcmp.ge.s32.totalorder %v659_v41, 32  ;;  %vm661_vm3 = vcmp.lt.s32.totalorder %v659_v41, 40  ;;  %p1194_p9 = scmp.ne.s32.totalorder %s1581_s14, %s1193_s16  ;;  %s1197_s18 = sshll.u32 %s1280_s8, 4  ;;  %s1198_s18 = int_to_ptr.vmem [resolvable:$false] %s1197_s18 }
  0xa8   : > { %910 = vmatprep.subr.bf16.mxu1 %v1278_v3  ;;  %v1033_v17 = vld [vmem:[#allocation9 + $0x38] sm:$0xff]   ;;  %v367_v19 = vld [vmem:[#allocation2 + $0x8] sm:$0xff]  ;;  %v1040_v21 = vld [vmem:[#allocation11 + $0x28] sm:$0xff]   ;;  %s1199_s19 = scalar_lea.vmem %s1198_s18, 512  ;;  %p1200_p7 = scmp.lt.s32.totalorder %s1581_s14, %s1198_s18 }
  0xa9   : > { %887 = vmatpush3.bf16.msra.mxu0 %v1026_v4  ;;  %v368_v20 = vpack.c.bf16 %v367_v19, %v366_v18  ;;  %v1041_v22 = vld [vmem:[#allocation11 + $0x30] sm:$0xff]   ;;  %v1042_v23 = vld [vmem:[#allocation11 + $0x38] sm:$0xff]   ;;  %v847_v29 = vld [vmem:[%s1631_s4] ss:$0 sm:$0xff]  ;;  %p1195_p12 = pnand %p1194_p9, %p1474_p6  ;;  %p1201_p10 = scmp.lt.s32.totalorder %s1199_s19, %s1193_s16 }
  0xaa   : > { %888 = vmatprep.subr.bf16.mxu0 %v1278_v3  ;;  %907 = vmatmul.mubr.msk.bf16.vlgmr.msra.gmra.mrb[0].mxu1 %vm487_vm1, %v1034_v7  ;;  %v848_v42 = vld [vmem:[%s1633_s6] ss:$0 sm:$0xff]  ;;  %vm1559_vm4 = vmand %vm660_vm2, %vm661_vm3 }
  0xab   : > { %911 = vmatpush3.bf16.msra.mxu1 %v1035_v9  ;;  %926 = vmatprep.mubr.msk.bf16.mxu1 %vm1279_vm0, %v1278_v3  ;;  %p1196_p3 = pneg %p1195_p12  ;;  %p1202_p13 = por %p1201_p10, %p1200_p7 }
  0xac   : > { %912 = vmatprep.subr.bf16.mxu1 %v1278_v3 }
  0xad   : > { %889 = vmatpush3.bf16.msra.mxu0 %v1027_v5  ;;  %p1203_p0 = pnand %p1202_p13, %p1196_p3 }
  0xae   : > { %890 = vmatprep.subr.bf16.mxu0 %v1278_v3 }
  0xaf   : > { %913 = vmatpush3.bf16.msra.mxu1 %v1036_v10 }
  0xb0   : > { %914 = vmatprep.subr.bf16.mxu1 %v1278_v3 }
  0xb1   : > { %891 = vmatpush3.bf16.msra.mxu0 %v1028_v8 }
  0xb2   : > { %892 = vmatprep.subr.bf16.mxu0 %v1278_v3 }
  0xb3   : > { %915 = vmatpush3.bf16.msra.mxu1 %v1037_v12 }
  0xb4   : > { %916 = vmatprep.subr.bf16.mxu1 %v1278_v3 }
  0xb5   : > { %893 = vmatpush3.bf16.msra.mxu0 %v1029_v11 }
  0xb6   : > { %894 = vmatprep.subr.bf16.mxu0 %v1278_v3 }
  0xb7   : > { %917 = vmatpush3.bf16.msra.mxu1 %v1038_v14 }
  0xb8   : > { %918 = vmatprep.subr.bf16.mxu1 %v1278_v3 }
  0xb9   : > { %895 = vmatpush3.bf16.msra.mxu0 %v1030_v13 }
  0xba   : > { %896 = vmatprep.subr.bf16.mxu0 %v1278_v3 }
  0xbb   : > { %919 = vmatpush3.bf16.msra.mxu1 %v1039_v16 }
  0xbc   : > { %920 = vmatprep.subr.bf16.mxu1 %v1278_v3 }
  0xbd   : > { %897 = vmatpush3.bf16.msra.mxu0 %v1031_v15 }
  0xbe   : > { %898 = vmatprep.subr.bf16.mxu0 %v1278_v3 }
  0xbf   : > { %921 = vmatpush3.bf16.msra.mxu1 %v1040_v21 }
  0xc0   : > { %922 = vmatprep.subr.bf16.mxu1 %v1278_v3 }
  0xc1   : > { %899 = vmatpush3.bf16.msra.mxu0 %v1033_v17 }
  0xc3   : > { %923 = vmatpush3.bf16.msra.mxu1 %v1041_v22 }
  0xc4   : > { %901 = vmatmul.mubr.bf16.vlgmr.msra.gmra.mrb[0].mxu0 %v368_v20  ;;  %924 = vmatprep.subr.bf16.mxu1 %v1278_v3 }
  0xc7   : > { %925 = vmatpush3.bf16.msra.mxu1 %v1042_v23 }
 0x17d   : > { %v525_v24 = vpop.f32.mrb[0].mxu1 }
 0x17e   : > { %v908_v25 = vpop.f32.mrb[1].mxu1 }
 0x17f   : > { %v528_v26 = vpop.f32.mrb[2].mxu1 }
 0x180   : > { %v909_v27 = vpop.f32.mrb[3].mxu1 }
 0x197   : > { %v469_v28 = vpop.f32.mrb[0].mxu0 }
 0x198   : > { %v526_v30 = vadd.f32 %v525_v24, %v469_v28  ;;  %v902_v31 = vpop.f32.mrb[1].mxu0 }
 0x199   : > { %v472_v32 = vpop.f32.mrb[2].mxu0 }
 0x19a   : > { %v539_v33 = vadd.f32 %v847_v29, %v526_v30  ;;  %v529_v34 = vadd.f32 %v528_v26, %v472_v32  ;;  %v903_v35 = vpop.f32.mrb[3].mxu0 }
 0x19c   : > { %v540_v36 = vadd.f32 %v847_v29, %v529_v34  ;;  %v541_v37 = vmax.f32 %v539_v33, 0.0 }
 0x19e   : > { %v542_v38 = vmax.f32 %v540_v36, 0.0 }
 0x1a0   : > { %v543_v39 = vpack.c.bf16 %v542_v38, %v541_v37 }
 0x1a2   : > { %927 = vmatmul.mubr.bf16.vlgmr.msra.gmra.mrb[4].mxu1 %v543_v39 }
 0x275   : > { %v649_v43 = vpop.f32.mrb[4].mxu1 }
 0x276   : > { %v650_v45 = vadd.f32 %v848_v42, %v649_v43  ;;  %v928_v46 = vpop.f32.mrb[5].mxu1 }
 0x277   : > { %v652_v47 = vpop.f32.mrb[6].mxu1 }
 0x278   : > { %656 = vst [vmem:[#allocation2] sm:$0xff] %v650_v45  ;;  %v653_v48 = vadd.f32 %v848_v42, %v652_v47  ;;  %v929_v49 = vpop.f32.mrb[7].mxu1  ;;  %v663_v50 = vsel %vm1559_vm4, %v650_v45, -inf }
 0x279   : > { %665 = vmax.xlane.f32.xlu0 %v663_v50 }
 0x27a   : > { %657 = vst [vmem:[#allocation2 + $0x8] sm:$0xff] %v653_v48  ;;  %v664_v51 = vsel %vm1559_vm4, %v653_v48, -inf }
 0x27d   : > { %667 = vmax.xlane.f32.xlu0 %v664_v51 }
 0x306   : > { %v666_v52 = vpop.xlane.xlu0 %665 }
 0x307   : > { %v669_v53 = vsub.f32 %v650_v45, %v666_v52 }
 0x309   : > { %v671_v54 = vsel %vm1559_vm4, %v669_v53, -inf }
 0x30a   : > { %v668_v55 = vpop.xlane.xlu0 %667  ;;  %v673_v56 = vmul.f32 1.442695, %v671_v54 }
 0x30b   : > { %v670_v57 = vsub.f32 %v653_v48, %v668_v55 }
 0x30c   : > { %1043 = vpow2.f32 %v673_v56 }
 0x30d   : > { %v672_v58 = vsel %vm1559_vm4, %v670_v57, -inf }
 0x30e   : > { %v675_v59 = vmul.f32 1.442695, %v672_v58 }
 0x310   : > { %1045 = vpow2.f32 %v675_v59 }
 0x316   : > { %v1044_v60 = vpop.eup %1043 }
 0x317   : > { %677 = vadd.xlane.f32.xlu1 %v1044_v60 }
 0x31a   : > { %v1046_v61 = vpop.eup %1045 }
 0x31b   : > { %679 = vadd.xlane.f32.xlu1 %v1046_v61 }
 0x3a4   : > { %v678_v62 = vpop.xlane.xlu1 %677 }
 0x3a5   : > { %1047 = vlog2.f32 %v678_v62 }
 0x3a8   : > { %v680_v63 = vpop.xlane.xlu1 %679 }
 0x3a9   : > { %1049 = vlog2.f32 %v680_v63 }
 0x3af   : > { %v1048_v0 = vpop.eup %1047 }
 0x3b0   : > { %v682_v1 = vmul.f32 0.6931472, %v1048_v0 }
 0x3b2   : > { %v685_v2 = vadd.f32 %v682_v1, %v666_v52 }
 0x3b3   : > { %v1050_v3 = vpop.eup %1049 }
 0x3b4   : > { %v687_v4 = vsub.f32 %v650_v45, %v685_v2  ;;  %v684_v5 = vmul.f32 0.6931472, %v1050_v3 }
 0x3b6   : > { %v689_v6 = vsel %vm1559_vm4, %v687_v4, %v650_v45  ;;  %v686_v7 = vadd.f32 %v684_v5, %v668_v55 }
 0x3b7   : > { %691 = vst [vmem:[%s1546_s29] sm:$0xff] %v689_v6 }
 0x3b8   : > { %v688_v8 = vsub.f32 %v653_v48, %v686_v7 }
 0x3ba   : > { %v690_v9 = vsel %vm1559_vm4, %v688_v8, %v653_v48 }
 0x3bb   : > { %692 = vst [vmem:[%s1546_s29 + $0x8] sm:$0xff] %v690_v9 }
 0x3bc   : > { %1206 = shalt.err (!%p1203_p0)
}
 0x3bd   : > { %s1207_s9 = scalar_lea.hbm %s1579_s11, 256  ;;  %s1211_s10 = scalar_lea.hbm %s1634_s7, 2048 }
 0x3be   : > { %p1208_p5 = scmp.ne.s32.totalorder %s1579_s11, %s1207_s9  ;;  %p1212_p2 = scmp.lt.u32.totalorder %s1579_s11, %s1634_s7 }
 0x3bf   : > { %p1213_p4 = scmp.lt.u32.totalorder %s1211_s10, %s1207_s9  ;;  %p1215_p9 = scmp.lt.u32.totalorder %s1207_s9, %s1579_s11 }
 0x3c0   : > { %p1209_p1 = pnand %p1208_p5, %p1474_p6 }
 0x3c1   : > { %p1214_p8 = por %p1213_p4, %p1212_p2 }
 0x3c2   : > { %p1210_p11 = pneg %p1209_p1 }
 0x3c3   : > { %p1216_p12 = por %p1215_p9, %p1214_p8 }
 0x3c5   : > { %p1217_p3 = pnand %p1216_p12, %p1210_p11 }
 0x3c7   : > { %1220 = shalt.err (!%p1217_p3)
}
 0x3c8   : > { %s1281_s23 = smov 128   ;;  %s1282_s15 = smov 8  }
 0x3c9   : > { %948 = dma.vmem_to_hbm [thread:$0]  (%p1474_p6), %s1581_s14, 256, %s1579_s11, %s694_s28, %s1281_s23, %s1281_s23, %s1282_s15  }
 0x3ca PF: > { %s1659_s22 = sld [smem:[#allocation17_spill]]  ;;  %s1660_s16 = sld [smem:[#allocation18_spill]] }
 0x3cb   : > { %p980_p7 = scmp.ge.s32.totalorder %s1267_s27, 2 }
 0x3d0   : > { %s722_s8 = sand.u32 1, %s1659_s22   ;;  %p1661_p10 = scmp.ne.s32.totalorder %s1660_s16, 0 }
 0x3d1   : > { %s723_s18 = scalar_lea.sflag [#allocation5], %s722_s8 }
 0x3d2   : > { %p968_p13 = pnand %p980_p7, %p1661_p10 }
 0x3d4   : > { %1250 = dma.done.wait (!%p968_p13), %s723_s18, 256  }
 0x3d5   : > { %1252 = vsyncadd (!%p968_p13), %s723_s18, 4294967040  ;;  %p22_p0 = scmp.ge.s32.totalorder %s1464_s20, 10   ;;  %s1662_s24 = smov %s1259_s25 }
 0x3d6   : > { %s1663_s25 = smov %s1263_s26  ;;  %s1664_s26 = smov %s1480_s13 }
 0x3d7   : > { %s1665_s27 = smov %s1464_s20  ;;  %24 = sbr.rel (!%p22_p0) target bundleno = 7 (0x7), region = 113 }
 0x3de   :  { %728 = vsyncpa [#allocation4], 1 }
 0x3df   :  { %730 = vsyncpa [#allocation4 + $0x1], 1 }
 0x3e0   :  { %731 = vsyncpa [#allocation7], 1 }
 0x3e1   :  { %732 = vsyncpa [#allocation10], 1 }
 0x3e2   :  { %733 = vsyncpa [#allocation5], 1 }
 0x3e3   :  { %735 = vsyncpa [#allocation5 + $0x1], 1 }

</bundles_post_ra>
